<compile_context>
chip_gen: v6e
topology: v6e:2x2x1
jax: 0.10.0
libtpu: 0.0.40
codegen_flags: <defaults>
</compile_context>

<pallas_src>
import functools

import jax
import jax.numpy as jnp
from jax.experimental import pallas as pl
from jax.experimental.pallas import tpu as pltpu

_LANES = 128
_SUBLANES = 8


def _cdiv(a, b):
    return -(-a // b)


def _round_up(a, b):
    return _cdiv(a, b) * b


def _tensorcores_per_chip():
    """Best-effort TensorCores-per-chip: 2 on v7x / megacore (v4, v5p), else 1."""
    try:
        kind = jax.devices()[0].device_kind.lower()
    except Exception:
        return 1
    if "lite" in kind or "v5e" in kind or "v6e" in kind or "v6" in kind:
        return 1
    if "v7" in kind or "7x" in kind or "v4" in kind or "v5p" in kind:
        return 2
    return 1


def _dice_kernel(x_ref, t_ref, inter_ref, denom_ref, *,
                 valid_rows, tiles_per_chunk):
    """Grid: (chunk [parallel across TCs], tile-within-chunk [arbitrary]).

    Accumulates vreg-shaped (1,8,128) f32 partials directly into the per-chunk
    output refs:
      inter = sum over rows of sigmoid(x) * t
      denom = sum over rows of (sigmoid(x) + t)
    """
    c = pl.program_id(0)
    i = pl.program_id(1)
    block_rows = x_ref.shape[0]

    @pl.when(i == 0)
    def _():
        inter_ref[...] = jnp.zeros_like(inter_ref)
        denom_ref[...] = jnp.zeros_like(denom_ref)

    x = x_ref[...].astype(jnp.float32)
    t = t_ref[...].astype(jnp.float32)
    # sigmoid(x) == 0.5*tanh(x/2) + 0.5 : a single EUP transcendental.
    s = 0.5 * jnp.tanh(0.5 * x) + 0.5
    prod = s * t
    tot = s + t

    def _accum(p, q):
        # (block_rows,128) -> (block_rows//8, 8, 128); summing axis 0 is plain
        # vreg-wise VPU adds (no cross-sublane XLU work).  The 8->1 and 128->1
        # reduces happen once, in the wrapper.
        inter_ref[...] += jnp.sum(p.reshape(-1, _SUBLANES, _LANES),
                                  axis=0).reshape(inter_ref.shape)
        denom_ref[...] += jnp.sum(q.reshape(-1, _SUBLANES, _LANES),
                                  axis=0).reshape(denom_ref.shape)

    # Logical (un-clamped) tile index -> first row it covers.  Row-index math:
    # int32 is safe up to 2^31 rows (~2^38 elements).
    base_row = (c * tiles_per_chunk + i) * block_rows
    is_full = base_row + block_rows <= valid_rows

    @pl.when(is_full)
    def _():
        _accum(prod, tot)

    @pl.when(jnp.logical_not(is_full))
    def _():
        # Ragged edge block / clamped duplicate tile: mask by global row index
        # so stale VMEM rows contribute nothing.  Must stay a select — masked
        # rows may hold garbage (NaN/Inf after the elementwise math above).
        row_ids = jax.lax.broadcasted_iota(jnp.int32, (block_rows, _LANES), 0)
        mask = (base_row + row_ids) < valid_rows
        _accum(jnp.where(mask, prod, 0.0), jnp.where(mask, tot, 0.0))


def _dice_from_sums(inter, denom, smooth):
    sm = jnp.float32(smooth)
    dice = (2.0 * inter + sm) / (denom + sm)
    return jnp.float32(1.0) - dice


def dice_loss(inputs, targets, smooth=1.0, *, max_block_rows=None):
    """Pallas implementation of DiceLoss.forward. Returns a scalar f32."""
    x = jnp.ravel(inputs)          # native dtype — kernel upcasts on the fly
    t = jnp.ravel(targets)
    n = x.shape[0]

    # Kernel handles the (8*128)-aligned prefix; the <=1023-element tail is a
    # tiny wrapper-side jnp computation (no full-array pad / rewrite).
    rows = (n // (_SUBLANES * _LANES)) * _SUBLANES
    n_main = rows * _LANES

    if rows == 0:
        # Degenerate tiny input — below the minimum (8,128) tile.
        xf = x.astype(jnp.float32)
        tf = t.astype(jnp.float32)
        s = jax.nn.sigmoid(xf)
        return _dice_from_sums(jnp.sum(s * tf), jnp.sum(s) + jnp.sum(tf), smooth)

    tail_inter = jnp.float32(0.0)
    tail_denom = jnp.float32(0.0)
    if n_main < n:
        xt = x[n_main:].astype(jnp.float32)
        tt = t[n_main:].astype(jnp.float32)
        st = jax.nn.sigmoid(xt)
        tail_inter = jnp.sum(st * tt)
        tail_denom = jnp.sum(st) + jnp.sum(tt)
        x = x[:n_main]
        t = t[:n_main]

    x2d = x.reshape(rows, _LANES)
    t2d = t.reshape(rows, _LANES)

    # Block sizing: ~1 MiB per input per pipeline buffer — already at the HBM
    # roofline, minimal VMEM pressure, room for triple buffering.
    if max_block_rows is None:
        per_row_bytes = _LANES * max(x.dtype.itemsize, t.dtype.itemsize)
        max_block_rows = max(_SUBLANES,
                             ((1 << 20) // per_row_bytes) // _SUBLANES * _SUBLANES)
    else:
        max_block_rows = max(_SUBLANES, (max_block_rows // _SUBLANES) * _SUBLANES)
    block_rows = min(_round_up(rows, _SUBLANES), max_block_rows)

    total_tiles = _cdiv(rows, block_rows)
    num_chunks = min(_tensorcores_per_chip(), total_tiles)
    num_chunks = max(num_chunks, 1)

    tiles_per_chunk = _cdiv(total_tiles, num_chunks)
    if num_chunks > 1 and tiles_per_chunk * num_chunks != total_tiles:
        # Rebalance so every chunk has the same number of real tiles (no
        # clamped duplicate DMA, no core imbalance) when a compatible smaller
        # block size exists.
        target = tiles_per_chunk * num_chunks
        cand = _round_up(_cdiv(rows, target), _SUBLANES)
        if _cdiv(rows, cand) == target:
            block_rows = cand
            total_tiles = target
    tiles_per_chunk = _cdiv(total_tiles, num_chunks)
    last_tile = total_tiles - 1
    need_clamp = num_chunks * tiles_per_chunk != total_tiles

    def in_map(c, i):
        tile = c * tiles_per_chunk + i
        if need_clamp:
            # Over-provisioned tiles of the last chunk re-read the final block;
            # their contribution is masked to zero inside the kernel.
            tile = jnp.minimum(tile, last_tile)
        return (tile, 0)

    out_struct = jax.ShapeDtypeStruct((num_chunks, _SUBLANES, _LANES), jnp.float32)
    out_spec = pl.BlockSpec((1, _SUBLANES, _LANES), lambda c, i: (c, 0, 0))

    kernel = functools.partial(_dice_kernel,
                               valid_rows=rows,
                               tiles_per_chunk=tiles_per_chunk)

    def build(buffer_count):
        if buffer_count is None:
            in_spec = pl.BlockSpec((block_rows, _LANES), in_map)
        else:
            in_spec = pl.BlockSpec((block_rows, _LANES), in_map,
                                   pipeline_mode=pl.Buffered(buffer_count))
        return pl.pallas_call(
            kernel,
            out_shape=(out_struct, out_struct),
            grid_spec=pltpu.PrefetchScalarGridSpec(
                num_scalar_prefetch=0,
                grid=(num_chunks, tiles_per_chunk),
                in_specs=[in_spec, in_spec],
                out_specs=(out_spec, out_spec),
            ),
            compiler_params=pltpu.CompilerParams(
                dimension_semantics=("parallel", "arbitrary"),
                vmem_limit_bytes=32 * 1024 * 1024,
            ),
        )

    try:
        # Pure streaming kernel: triple-buffer the inputs to hide DMA jitter.
        inter_p, denom_p = build(3)(x2d, t2d)
    except Exception:
        # Fallback: default double-buffered pipeline (still correct & fast).
        inter_p, denom_p = build(None)(x2d, t2d)

    inter = jnp.sum(inter_p) + tail_inter
    denom = jnp.sum(denom_p) + tail_denom
    return _dice_from_sums(inter, denom, smooth)


def _dice_loss_ref(inputs, targets, smooth=1.0):
    s = jax.nn.sigmoid(inputs.astype(jnp.float32)).ravel()
    t = targets.astype(jnp.float32).ravel()
    inter = jnp.sum(s * t)
    dice = (2.0 * inter + smooth) / (jnp.sum(s) + jnp.sum(t) + smooth)
    return 1.0 - dice


if __name__ == "__main__":
    key = jax.random.PRNGKey(0)
    k1, k2, k3, k4, k5, k6, k7 = jax.random.split(key, 7)

    # Lane-aligned NCHW: batch=2, channels=4, spatial=16x16 (2048 elements).
    x1 = jax.random.normal(k1, (2, 4, 16, 16), dtype=jnp.float32)
    t1 = (jax.random.uniform(k2, (2, 4, 16, 16)) > 0.5).astype(jnp.float32)

    # Ragged size (3*5*7*11 = 1155): 1024-element kernel prefix + 131-elem tail.
    x2 = jax.random.normal(k3, (3, 5, 7, 11), dtype=jnp.float32)
    t2 = (jax.random.uniform(k4, (3, 5, 7, 11)) > 0.5).astype(jnp.float32)

    # 3072 elements: with tiny tiles -> 3 tiles (odd tile count path).
    x3 = jax.random.normal(k5, (2, 4, 16, 24), dtype=jnp.float32)
    t3 = (jax.random.uniform(k6, (2, 4, 16, 24)) > 0.5).astype(jnp.float32)

    # Native-dtype streaming: bf16 logits, f32 targets.
    x4 = jax.random.normal(k7, (2, 4, 16, 16), dtype=jnp.bfloat16)
    t4 = t1

    cases = [
        (x1, t1, dict()),                   # single tile, default block size
        (x2, t2, dict()),                   # kernel prefix + wrapper tail
        (x1, t1, dict(max_block_rows=8)),   # multi-tile accumulation
        (x3, t3, dict(max_block_rows=8)),   # odd tile count (rebalance/clamp)
        (x4, t4, dict()),                   # bf16 streaming + in-kernel upcast
    ]
    for xi, ti, kw in cases:
        got = jax.block_until_ready(dice_loss(xi, ti, smooth=1.0, **kw))
        ref = _dice_loss_ref(xi, ti, smooth=1.0)
        assert jnp.allclose(got, ref, atol=1e-5, rtol=1e-5), (kw, got, ref)

    print("KERNEL_OK")
</pallas_src>

<mosaic_0001>
module attributes {stable_mosaic.version = 11 : i64} {
  func.func @_dice_kernel(%arg0: i32, %arg1: i32, %arg2: memref<16x128xf32, #tpu.memory_space<vmem>>, %arg3: memref<16x128xf32, #tpu.memory_space<vmem>>, %arg4: memref<1x8x128xf32, #tpu.memory_space<vmem>>, %arg5: memref<1x8x128xf32, #tpu.memory_space<vmem>>) attributes {dimension_semantics = [#tpu.dimension_semantics<parallel>, #tpu.dimension_semantics<arbitrary>], iteration_bounds = array<i64: 1, 1>, scalar_prefetch = 0 : i64, scratch_operands = 0 : i64, tpu.core_type = #tpu.core_type<tc>, window_params = [{transform_indices = @transform_0, window_bounds = array<i64: 16, 128>}, {transform_indices = @transform_1, window_bounds = array<i64: 16, 128>}, {transform_indices = @transform_2, window_bounds = array<i64: 1, 8, 128>}, {transform_indices = @transform_3, window_bounds = array<i64: 1, 8, 128>}]} {
    %c0_i32 = arith.constant 0 : i32
    %0 = arith.cmpi eq, %arg1, %c0_i32 : i32
    %1 = arith.extui %0 : i1 to i32
    %c0_i32_0 = arith.constant 0 : i32
    %2 = arith.cmpi ne, %1, %c0_i32_0 : i32
    scf.if %2 {
      %cst_10 = arith.constant 0.000000e+00 : f32
      %24 = vector.broadcast %cst_10 : f32 to vector<1x8x128xf32>
      %c0_11 = arith.constant 0 : index
      %c0_12 = arith.constant 0 : index
      %c0_13 = arith.constant 0 : index
      %25 = vector.load %arg4[%c0_11, %c0_12, %c0_13] : memref<1x8x128xf32, #tpu.memory_space<vmem>>, vector<1x8x128xf32>
      tpu.vector_store %arg4[%c0_11, %c0_12, %c0_13], %24 {strides = array<i32>} : memref<1x8x128xf32, #tpu.memory_space<vmem>>, vector<1x8x128xf32>,
      %cst_14 = arith.constant 0.000000e+00 : f32
      %26 = vector.broadcast %cst_14 : f32 to vector<1x8x128xf32>
      %c0_15 = arith.constant 0 : index
      %c0_16 = arith.constant 0 : index
      %c0_17 = arith.constant 0 : index
      %27 = vector.load %arg5[%c0_15, %c0_16, %c0_17] : memref<1x8x128xf32, #tpu.memory_space<vmem>>, vector<1x8x128xf32>
      tpu.vector_store %arg5[%c0_15, %c0_16, %c0_17], %26 {strides = array<i32>} : memref<1x8x128xf32, #tpu.memory_space<vmem>>, vector<1x8x128xf32>,
    } else {
    }
    %c0 = arith.constant 0 : index
    %c0_1 = arith.constant 0 : index
    %3 = vector.load %arg2[%c0, %c0_1] : memref<16x128xf32, #tpu.memory_space<vmem>>, vector<16x128xf32>
    %c0_2 = arith.constant 0 : index
    %c0_3 = arith.constant 0 : index
    %4 = vector.load %arg3[%c0_2, %c0_3] : memref<16x128xf32, #tpu.memory_space<vmem>>, vector<16x128xf32>
    %cst = arith.constant 5.000000e-01 : f32
    %5 = vector.broadcast %cst : f32 to vector<16x128xf32>
    %6 = arith.mulf %5, %3 : vector<16x128xf32>
    %7 = math.tanh %6 : vector<16x128xf32>
    %cst_4 = arith.constant 5.000000e-01 : f32
    %8 = vector.broadcast %cst_4 : f32 to vector<16x128xf32>
    %9 = arith.mulf %8, %7 : vector<16x128xf32>
    %cst_5 = arith.constant 5.000000e-01 : f32
    %10 = vector.broadcast %cst_5 : f32 to vector<16x128xf32>
    %11 = arith.addf %9, %10 : vector<16x128xf32>
    %12 = arith.mulf %11, %4 : vector<16x128xf32>
    %13 = arith.addf %11, %4 : vector<16x128xf32>
    %c1_i32 = arith.constant 1 : i32
    %14 = arith.muli %arg0, %c1_i32 : i32
    %15 = arith.addi %14, %arg1 : i32
    %c16_i32 = arith.constant 16 : i32
    %16 = arith.muli %15, %c16_i32 : i32
    %c16_i32_6 = arith.constant 16 : i32
    %17 = arith.addi %16, %c16_i32_6 : i32
    %c16_i32_7 = arith.constant 16 : i32
    %18 = arith.cmpi sle, %17, %c16_i32_7 : i32
    %19 = arith.extui %18 : i1 to i32
    %c0_i32_8 = arith.constant 0 : i32
    %20 = arith.cmpi ne, %19, %c0_i32_8 : i32
    scf.if %20 {
      %c0_10 = arith.constant 0 : index
      %c0_11 = arith.constant 0 : index
      %c0_12 = arith.constant 0 : index
      %24 = vector.load %arg4[%c0_10, %c0_11, %c0_12] : memref<1x8x128xf32, #tpu.memory_space<vmem>>, vector<1x8x128xf32>
      %25 = vector.shape_cast %12 : vector<16x128xf32> to vector<2x8x128xf32>
      %cst_13 = arith.constant dense<0.000000e+00> : vector<8x128xf32>
      %26 = vector.multi_reduction <add>, %25, %cst_13 [0] : vector<2x8x128xf32> to vector<8x128xf32>
      %27 = vector.shape_cast %26 : vector<8x128xf32> to vector<1x8x128xf32>
      %28 = arith.addf %24, %27 : vector<1x8x128xf32>
      %c0_14 = arith.constant 0 : index
      %c0_15 = arith.constant 0 : index
      %c0_16 = arith.constant 0 : index
      %29 = vector.load %arg4[%c0_14, %c0_15, %c0_16] : memref<1x8x128xf32, #tpu.memory_space<vmem>>, vector<1x8x128xf32>
      tpu.vector_store %arg4[%c0_14, %c0_15, %c0_16], %28 {strides = array<i32>} : memref<1x8x128xf32, #tpu.memory_space<vmem>>, vector<1x8x128xf32>,
      %c0_17 = arith.constant 0 : index
      %c0_18 = arith.constant 0 : index
      %c0_19 = arith.constant 0 : index
      %30 = vector.load %arg5[%c0_17, %c0_18, %c0_19] : memref<1x8x128xf32, #tpu.memory_space<vmem>>, vector<1x8x128xf32>
      %31 = vector.shape_cast %13 : vector<16x128xf32> to vector<2x8x128xf32>
      %cst_20 = arith.constant dense<0.000000e+00> : vector<8x128xf32>
      %32 = vector.multi_reduction <add>, %31, %cst_20 [0] : vector<2x8x128xf32> to vector<8x128xf32>
      %33 = vector.shape_cast %32 : vector<8x128xf32> to vector<1x8x128xf32>
      %34 = arith.addf %30, %33 : vector<1x8x128xf32>
      %c0_21 = arith.constant 0 : index
      %c0_22 = arith.constant 0 : index
      %c0_23 = arith.constant 0 : index
      %35 = vector.load %arg5[%c0_21, %c0_22, %c0_23] : memref<1x8x128xf32, #tpu.memory_space<vmem>>, vector<1x8x128xf32>
      tpu.vector_store %arg5[%c0_21, %c0_22, %c0_23], %34 {strides = array<i32>} : memref<1x8x128xf32, #tpu.memory_space<vmem>>, vector<1x8x128xf32>,
    } else {
    }
    %true = arith.constant true
    %21 = arith.xori %18, %true : i1
    %22 = arith.extui %21 : i1 to i32
    %c0_i32_9 = arith.constant 0 : i32
    %23 = arith.cmpi ne, %22, %c0_i32_9 : i32
    scf.if %23 {
      %24 = tpu.iota {dimensions = array<i32: 0>} : vector<16x128xi32>
      %25 = vector.broadcast %16 : i32 to vector<16x128xi32>
      %26 = arith.addi %25, %24 : vector<16x128xi32>
      %c16_i32_10 = arith.constant 16 : i32
      %27 = vector.broadcast %c16_i32_10 : i32 to vector<16x128xi32>
      %28 = arith.cmpi slt, %26, %27 : vector<16x128xi32>
      %cst_11 = arith.constant 0.000000e+00 : f32
      %29 = vector.broadcast %cst_11 : f32 to vector<16x128xf32>
      %30 = arith.select %28, %12, %29 : vector<16x128xi1>, vector<16x128xf32>
      %cst_12 = arith.constant 0.000000e+00 : f32
      %31 = vector.broadcast %cst_12 : f32 to vector<16x128xf32>
      %32 = arith.select %28, %13, %31 : vector<16x128xi1>, vector<16x128xf32>
      %c0_13 = arith.constant 0 : index
      %c0_14 = arith.constant 0 : index
      %c0_15 = arith.constant 0 : index
      %33 = vector.load %arg4[%c0_13, %c0_14, %c0_15] : memref<1x8x128xf32, #tpu.memory_space<vmem>>, vector<1x8x128xf32>
      %34 = vector.shape_cast %30 : vector<16x128xf32> to vector<2x8x128xf32>
      %cst_16 = arith.constant dense<0.000000e+00> : vector<8x128xf32>
      %35 = vector.multi_reduction <add>, %34, %cst_16 [0] : vector<2x8x128xf32> to vector<8x128xf32>
      %36 = vector.shape_cast %35 : vector<8x128xf32> to vector<1x8x128xf32>
      %37 = arith.addf %33, %36 : vector<1x8x128xf32>
      %c0_17 = arith.constant 0 : index
      %c0_18 = arith.constant 0 : index
      %c0_19 = arith.constant 0 : index
      %38 = vector.load %arg4[%c0_17, %c0_18, %c0_19] : memref<1x8x128xf32, #tpu.memory_space<vmem>>, vector<1x8x128xf32>
      tpu.vector_store %arg4[%c0_17, %c0_18, %c0_19], %37 {strides = array<i32>} : memref<1x8x128xf32, #tpu.memory_space<vmem>>, vector<1x8x128xf32>,
      %c0_20 = arith.constant 0 : index
      %c0_21 = arith.constant 0 : index
      %c0_22 = arith.constant 0 : index
      %39 = vector.load %arg5[%c0_20, %c0_21, %c0_22] : memref<1x8x128xf32, #tpu.memory_space<vmem>>, vector<1x8x128xf32>
      %40 = vector.shape_cast %32 : vector<16x128xf32> to vector<2x8x128xf32>
      %cst_23 = arith.constant dense<0.000000e+00> : vector<8x128xf32>
      %41 = vector.multi_reduction <add>, %40, %cst_23 [0] : vector<2x8x128xf32> to vector<8x128xf32>
      %42 = vector.shape_cast %41 : vector<8x128xf32> to vector<1x8x128xf32>
      %43 = arith.addf %39, %42 : vector<1x8x128xf32>
      %c0_24 = arith.constant 0 : index
      %c0_25 = arith.constant 0 : index
      %c0_26 = arith.constant 0 : index
      %44 = vector.load %arg5[%c0_24, %c0_25, %c0_26] : memref<1x8x128xf32, #tpu.memory_space<vmem>>, vector<1x8x128xf32>
      tpu.vector_store %arg5[%c0_24, %c0_25, %c0_26], %43 {strides = array<i32>} : memref<1x8x128xf32, #tpu.memory_space<vmem>>, vector<1x8x128xf32>,
    } else {
    }
    return
  }
  func.func @transform_0(%arg0: i32, %arg1: i32) -> (i32, i32) {
    %c1_i32 = arith.constant 1 : i32
    %0 = arith.muli %arg0, %c1_i32 : i32
    %1 = arith.addi %0, %arg1 : i32
    %c0_i32 = arith.constant 0 : i32
    %c0_i32_0 = arith.constant 0 : i32
    return %1, %c0_i32 : i32, i32
  }
  func.func @transform_1(%arg0: i32, %arg1: i32) -> (i32, i32) {
    %c1_i32 = arith.constant 1 : i32
    %0 = arith.muli %arg0, %c1_i32 : i32
    %1 = arith.addi %0, %arg1 : i32
    %c0_i32 = arith.constant 0 : i32
    %c0_i32_0 = arith.constant 0 : i32
    return %1, %c0_i32 : i32, i32
  }
  func.func @transform_2(%arg0: i32, %arg1: i32) -> (i32, i32, i32) {
    %c0_i32 = arith.constant 0 : i32
    %c0_i32_0 = arith.constant 0 : i32
    %c0_i32_1 = arith.constant 0 : i32
    return %arg0, %c0_i32, %c0_i32_0 : i32, i32, i32
  }
  func.func @transform_3(%arg0: i32, %arg1: i32) -> (i32, i32, i32) {
    %c0_i32 = arith.constant 0 : i32
    %c0_i32_0 = arith.constant 0 : i32
    %c0_i32_1 = arith.constant 0 : i32
    return %arg0, %c0_i32, %c0_i32_0 : i32, i32, i32
  }
}

</mosaic_0001>

<bundles_post_ra>
// kernel: tpu_custom_call.1
= control target key start
LH: loop header
LB: loop body
LE: loop exit
PB: predicated region body
PF: predicated region fallthrough
CT: control target
= control target key end

     0   :  { %9 = vsyncpa [#allocation3], 0  ;;  %s283_s0 = inlined_call_operand.hbm [shape: f32[16,128], index: 0, kind: input, shape index: {}]   ;;  %s284_s1 = inlined_call_operand.hbm [shape: f32[16,128], index: 1, kind: input, shape index: {}]   ;;  %s285_s2 = inlined_call_operand.hbm [shape: f32[1,8,128], index: 2, kind: output, shape index: {0}]   ;;  %s286_s3 = inlined_call_operand.hbm [shape: f32[1,8,128], index: 3, kind: output, shape index: {1}]  }
   0x1   :  { %10 = vsyncpa [#allocation6], 0 }
   0x2   :  { %11 = vsyncpa [#allocation4], 0 }
   0x3   :  { %12 = vsyncpa [#allocation9], 0  ;;  %s245_s12 = smov [#allocation2]  }
   0x4   :  { %s22_s13 = sshll.u32 %s245_s12, 4  ;;  %s23_s13 = int_to_ptr.vmem [resolvable:$true] %s22_s13 }
   0x5   :  { %s165_s14 = scalar_lea.vmem %s23_s13, 256  ;;  %p170_p1 = scmp.lt.s32.totalorder %s23_s13, %s23_s13 }
   0x6   :  { %p166_p0 = scmp.ne.s32.totalorder %s23_s13, %s165_s14  ;;  %p171_p2 = scmp.lt.s32.totalorder %s165_s14, %s165_s14 }
   0x8   :  { %p172_p3 = por %p171_p2, %p170_p1 }
   0xa   :  { %p173_p4 = pnand %p172_p3, %p166_p0 }
   0xc   :  { %176 = shalt.err (!%p173_p4)
}
   0xd   :  { %s246_s15 = smov 128   ;;  %s247_s16 = smov 8  }
   0xe   :  { %28 = dma.hbm_to_vmem [thread:$0]  %s283_s0, 256, %s23_s13, [#allocation3], %s246_s15, %s246_s15, %s247_s16  }
   0xf   :  { %s248_s19 = smov [#allocation5]  }
  0x10   :  { %s38_s20 = sshll.u32 %s248_s19, 4  ;;  %s39_s20 = int_to_ptr.vmem [resolvable:$true] %s38_s20 }
  0x11   :  { %s185_s21 = scalar_lea.vmem %s39_s20, 256  ;;  %p190_p6 = scmp.lt.s32.totalorder %s39_s20, %s39_s20 }
  0x12   :  { %p186_p5 = scmp.ne.s32.totalorder %s39_s20, %s185_s21  ;;  %p191_p7 = scmp.lt.s32.totalorder %s185_s21, %s185_s21 }
  0x14   :  { %p192_p8 = por %p191_p7, %p190_p6 }
  0x16   :  { %p193_p9 = pnand %p192_p8, %p186_p5 }
  0x18   :  { %196 = shalt.err (!%p193_p9)
}
  0x19   :  { %44 = dma.hbm_to_vmem [thread:$0]  %s284_s1, 256, %s39_s20, [#allocation6], %s246_s15, %s246_s15, %s247_s16  }
  0x1a   :  { %237 = dma.done.wait [#allocation3], 256  }
  0x1b   :  { %238 = vsyncadd [#allocation3], 4294967040 }
  0x1c   :  { %239 = dma.done.wait [#allocation6], 256  }
  0x1d   :  { %240 = vsyncadd [#allocation6], 4294967040  ;;  %v61_v0 = vld [vmem:[#allocation2] sm:$0xff]  ;;  %v62_v1 = vld [vmem:[#allocation2 + $0x8] sm:$0xff]  ;;  %s249_s0 = smov [#allocation7]   ;;  %s250_s24 = smov [#allocation8]  }
  0x1e   :  { %v65_v2 = vmul.f32 0.5, %v61_v0  ;;  %v66_v3 = vmul.f32 0.5, %v62_v1  ;;  %v63_v7 = vld [vmem:[#allocation5] sm:$0xff]  ;;  %v64_v9 = vld [vmem:[#allocation5 + $0x8] sm:$0xff]  ;;  %s122_s1 = sshll.u32 %s249_s0, 4  ;;  %s132_s25 = sshll.u32 %s250_s24, 4  ;;  %s123_s1 = int_to_ptr.vmem [resolvable:$true] %s122_s1  ;;  %s133_s25 = int_to_ptr.vmem [resolvable:$true] %s132_s25 }
  0x1f   :  { %s197_s26 = scalar_lea.vmem %s123_s1, 128  ;;  %p202_p11 = scmp.lt.s32.totalorder %s123_s1, %s123_s1 }
  0x20   :  { %153 = vtanh.f32 %v65_v2  ;;  %p198_p10 = scmp.ne.s32.totalorder %s123_s1, %s197_s26  ;;  %p203_p12 = scmp.lt.s32.totalorder %s197_s26, %s197_s26 }
  0x21   :  { %155 = vtanh.f32 %v66_v3 }
  0x22   :  { %p204_p13 = por %p203_p12, %p202_p11 }
  0x24   :  { %p205_p0 = pnand %p204_p13, %p198_p10 }
  0x2d   :  { %v154_v4 = vpop.eup %153 }
  0x2e   :  { %v156_v5 = vpop.eup %155  ;;  %v69_v6 = vmul.f32 0.5, %v154_v4 }
  0x2f   :  { %v70_v8 = vmul.f32 0.5, %v156_v5 }
  0x30   :  { %v71_v10 = vadd.f32 0.5, %v69_v6 }
  0x31   :  { %v72_v11 = vadd.f32 0.5, %v70_v8 }
  0x32   :  { %v73_v12 = vmul.f32 %v71_v10, %v63_v7  ;;  %v75_v13 = vadd.f32 %v71_v10, %v63_v7 }
  0x33   :  { %v74_v14 = vmul.f32 %v72_v11, %v64_v9  ;;  %v76_v15 = vadd.f32 %v72_v11, %v64_v9 }
  0x35   :  { %v85_v16 = vadd.f32 %v74_v14, %v73_v12  ;;  %v89_v17 = vadd.f32 %v76_v15, %v75_v13 }
  0x37   :  { %87 = vst [vmem:[#allocation7] sm:$0xff] %v85_v16  ;;  %91 = vst [vmem:[#allocation8] sm:$0xff] %v89_v17 }
  0x38   :  { %208 = shalt.err (!%p205_p0)
}
  0x39   :  { %125 = dma.vmem_to_hbm [thread:$0]  %s123_s1, 128, %s285_s2, [#allocation4]  }
  0x3a   :  { %s217_s29 = scalar_lea.vmem %s133_s25, 128  ;;  %p222_p2 = scmp.lt.s32.totalorder %s133_s25, %s133_s25 }
  0x3b   :  { %p218_p1 = scmp.ne.s32.totalorder %s133_s25, %s217_s29  ;;  %p223_p3 = scmp.lt.s32.totalorder %s217_s29, %s217_s29 }
  0x3d   :  { %p224_p4 = por %p223_p3, %p222_p2 }
  0x3f   :  { %p225_p5 = pnand %p224_p4, %p218_p1 }
  0x41   :  { %228 = shalt.err (!%p225_p5)
}
  0x42   :  { %135 = dma.vmem_to_hbm [thread:$0]  %s133_s25, 128, %s286_s3, [#allocation9]  }
  0x43   :  { %241 = dma.done.wait [#allocation4], 128  }
  0x44   :  { %242 = vsyncadd [#allocation4], 4294967168 }
  0x45   :  { %243 = dma.done.wait [#allocation9], 128  }
  0x46   :  { %244 = vsyncadd [#allocation9], 4294967168 }
  0x47   :  { %142 = vsyncpa [#allocation3], 1 }
  0x48   :  { %143 = vsyncpa [#allocation6], 1 }
  0x49   :  { %144 = vsyncpa [#allocation4], 1 }
  0x4a   :  { %145 = vsyncpa [#allocation9], 1 }

</bundles_post_ra>
